<compile_context>
chip_gen: v6e
topology: v6e:2x2x1
jax: 0.10.0
libtpu: 0.0.40
codegen_flags: <defaults>
</compile_context>

<pallas_src>
import functools
import math

import numpy as np
import jax
import jax.numpy as jnp
from jax import lax
from jax.experimental import pallas as pl
from jax.experimental.pallas import tpu as pltpu


# ---------------------------------------------------------------------------
# Route construction (exactly mirrors DTree.__init__ leaf-route loops).
# ---------------------------------------------------------------------------
def build_routes(depth):
    num_nodes = 2 ** (depth + 1) - 1
    num_leaves = 2 ** (depth + 1)
    indices = np.zeros((num_leaves, depth + 1), np.int32)
    sides = np.zeros((num_leaves, depth + 1), np.int32)
    for i in range(num_leaves):
        temp, temp_sides = [], []
        leaf_idx = num_nodes + i
        for _ in range(depth):
            parent_idx = (leaf_idx - 1) // 2
            temp.append(parent_idx)
            temp_sides.append(1 if (leaf_idx - 1) % 2 == 0 else 0)
            leaf_idx = parent_idx
        temp_sides.append(1 if (leaf_idx - 1) % 2 == 0 else 0)
        temp.append(0)
        indices[i] = np.array(temp[::-1], np.int32)
        sides[i] = np.array(temp_sides[::-1], np.int32)
    return indices, sides


# ---------------------------------------------------------------------------
# Pallas kernel: one natural-layout batch tile.
# ---------------------------------------------------------------------------
def dtree_kernel(out_dim, num_leaves, node_rows, route_rows,
                 x_ref, wpre_ref, bpre_ref, wstack_ref, bleaf_ref, o_ref):
    eps = 0.01
    x = x_ref[...]                                                   # (TB, D) natural layout

    # pre_network: Linear(D, F) + ReLU.  The transpose of the batch tile is
    # folded into the matmul: contract the feature dim of both operands
    # -> result is feature-major (F, TB), so every later op is lane-dense.
    h = lax.dot_general(wpre_ref[...], x, (((1,), (1,)), ((), ())),
                        preferred_element_type=jnp.float32) + bpre_ref[...]
    h = jnp.maximum(h, 0.0)                                          # (F, TB)

    # Per-column inverse L2 norm (EUP rsqrt).  Clamp on sum-of-squares so
    # all-zero columns give 0 scores, like F.normalize(eps=1e-12).
    inv_norm = lax.rsqrt(jnp.maximum(jnp.sum(h * h, axis=0, keepdims=True), 1e-24))

    # ONE fused matmul for node scores ([W; -W], zero-padded rows) and the
    # leaf models: (node_rows + L*O, F) @ (F, TB).
    stacked = jnp.dot(wstack_ref[...], h, preferred_element_type=jnp.float32)
    scores = stacked[:node_rows, :] * inv_norm       # W·(h/|h|) == (W·h)/|h|
    res = stacked[node_rows:, :] + bleaf_ref[...]    # (L*O, TB) leaf-model outputs

    # rows [0, N): right_dist, rows [N, 2N): left_dist (via the -W half).
    dists = (1.0 - scores) * 0.5
    logp = jnp.log(jnp.clip(dists, eps, 1.0 - eps))                  # (node_rows, TB)

    # Route gather + path sum + leaf-weighted reduce, fully unrolled on the
    # VPU (an (L, 2N) matmul is >90% padding on a 128/256-wide MXU).
    ent = None
    acc = None
    for l in range(num_leaves):
        rows = route_rows[l]
        ll = logp[rows[0]:rows[0] + 1, :]                            # (1, TB)
        for r in rows[1:]:
            ll = ll + logp[r:r + 1, :]
        s = jnp.exp(ll)                                              # leaf weight
        ent = s * ll if ent is None else ent + s * ll
        contrib = s * res[l * out_dim:(l + 1) * out_dim, :]
        acc = contrib if acc is None else acc + contrib

    # Single lane-dense output slab: rows [0, O) = leaf-weighted output,
    # row O = per-sample entropy (batch-global scale applied in the wrapper).
    o_ref[0:out_dim, :] = acc
    o_ref[out_dim:out_dim + 1, :] = -ent


# ---------------------------------------------------------------------------
# Parameter setup (torch-layout weights).
# ---------------------------------------------------------------------------
def make_dtree(input_dim, out_dim, depth, key):
    D = int(np.prod(input_dim))
    F = D + 1
    num_nodes = 2 ** (depth + 1) - 1
    num_leaves = 2 ** (depth + 1)

    k1, k2, k3, k4, k5, k6 = jax.random.split(key, 6)
    # torch nn.Linear layout: (out_features, in_features)
    w_pre = jax.random.normal(k1, (F, D), jnp.float32) * (1.0 / math.sqrt(D))
    b_pre = jax.random.normal(k2, (F, 1), jnp.float32) * 0.01
    right_w = jax.random.normal(k3, (num_nodes, F), jnp.float32)
    rw_norm = jnp.sqrt(jnp.sum(right_w * right_w, axis=1, keepdims=True))
    w_nodes_n = right_w / jnp.maximum(rw_norm, 1e-12)                # (N, F), pre-normalised
    w_nodes_pm = jnp.concatenate([w_nodes_n, -w_nodes_n], axis=0)    # (2N, F): right & left scores
    node_rows = ((2 * num_nodes + 7) // 8) * 8                       # sublane-align the stack split
    w_nodes_pad = jnp.pad(w_nodes_pm, ((0, node_rows - 2 * num_nodes), (0, 0)))
    w_leaf = jax.random.normal(k4, (out_dim * num_leaves, F), jnp.float32) * (1.0 / math.sqrt(F))
    b_leaf = jax.random.normal(k5, (out_dim * num_leaves, 1), jnp.float32) * 0.01
    w_stack = jnp.concatenate([w_nodes_pad, w_leaf], axis=0)         # (node_rows + L*O, F)

    # Static per-leaf row indices into the (2N, TB) log-prob block:
    # side 0 -> right_dist row n, side 1 -> left_dist row N + n.
    indices, sides = build_routes(depth)
    route_rows = tuple(
        tuple(int(indices[l, j]) + (num_nodes if sides[l, j] == 1 else 0)
              for j in range(depth + 1))
        for l in range(num_leaves))

    # Matches the reference formula; it is 0 for depth == 1 (log(1) == 0) and
    # divides by zero there too -- inherited behaviour, not guarded.
    max_entropy = float(num_leaves * (1.0 / depth) * math.log(depth))
    # TODO(synk): torch.randn(1) in the original forward draws fresh noise on
    # every call; replaced with a deterministic PRNG-derived scalar.
    noise = jax.random.normal(k6, (), jnp.float32)

    return dict(w_pre=w_pre, b_pre=b_pre, w_nodes_n=w_nodes_n, w_leaf=w_leaf,
                b_leaf=b_leaf, w_stack=w_stack, node_rows=node_rows,
                route_rows=route_rows, noise=noise, max_entropy=max_entropy,
                num_leaves=num_leaves, out_dim=out_dim, depth=depth)


# ---------------------------------------------------------------------------
# Tile sizing + wrapper calling pallas_call.
# ---------------------------------------------------------------------------
def _pick_tile_b(D, F, M_stack, L, O, batch,
                 requested=2048, budget_bytes=24 * 2 ** 20):
    """Batch tile: multiple of 256 (fills the 256-wide v6e/v7x MXU N-dim, and
    v5e's 128), budgeted against the smallest-VMEM generation (v7x: 64 MiB
    physical / 32 MiB scoped default)."""
    d_pad = ((D + 127) // 128) * 128        # lane padding of the (TB, D) x tile
    const_bytes = 2 * 4 * (F * D + F + M_stack * F + L * O)  # resident weights
    tb = max(256, (requested // 256) * 256)
    while tb > 256:
        per_tile = 4 * tb * (
            2 * d_pad                 # double-buffered (TB, D) input blocks (lane padded)
            + 2 * (O + 8)             # double-buffered (O+1, TB) output blocks (sublane padded)
            + F + M_stack             # h + stacked matmul result
            + 4 * L + L * O)          # logp / per-leaf temps / res / acc slack
        if const_bytes + per_tile <= budget_bytes:
            break
        tb = max(256, (tb // 2) // 256 * 256)
    if batch <= tb:
        return batch                  # single tile: block == full array is always legal
    return tb


def dtree_forward_pallas(x, p, tile_b=None):
    B, D = x.shape
    F = D + 1
    L = p["num_leaves"]
    O = p["out_dim"]
    M = p["w_stack"].shape[0]

    if tile_b is None:
        tile_b = _pick_tile_b(D, F, M, L, O, B)
    b_pad = pl.cdiv(B, tile_b) * tile_b
    x_p = jnp.pad(x, ((0, b_pad - B), (0, 0))) if b_pad != B else x
    # NOTE(v7x): for large batches prefer an even step count >= 2 so both
    # TensorCores get work when the batch axis is sharded.
    grid = (b_pad // tile_b,)

    kernel = functools.partial(dtree_kernel, O, L, p["node_rows"], p["route_rows"])
    const = lambda i: (0, 0)                         # weights stay VMEM-resident across steps
    out = pl.pallas_call(
        kernel,
        grid=grid,
        in_specs=[
            pl.BlockSpec((tile_b, D), lambda i: (i, 0)),  # natural-layout x tile (pipelined)
            pl.BlockSpec((F, D), const),
            pl.BlockSpec((F, 1), const),
            pl.BlockSpec((M, F), const),
            pl.BlockSpec((L * O, 1), const),
        ],
        out_specs=pl.BlockSpec((O + 1, tile_b), lambda i: (0, i)),   # lane-dense output slab
        out_shape=jax.ShapeDtypeStruct((O + 1, b_pad), jnp.float32),
        compiler_params=pltpu.CompilerParams(
            # "parallel" lets the batch axis shard across v7x's two TCs; if
            # profiling shows one idle TC, switch to pltpu.CORE_PARALLEL.
            dimension_semantics=("parallel",),
            vmem_limit_bytes=32 * 1024 * 1024,
        ),
    )(x_p, p["w_pre"], p["b_pre"], p["w_stack"], p["b_leaf"])

    # Batch-global entropy-mean scale, applied outside the kernel (it is a
    # scalar multiplier of the output, so the math is identical to in-kernel
    # scaling; padded columns are excluded from the mean).
    entropy = out[O, :B]
    entropy_loss_mean = jnp.sum(entropy) / (B * p["max_entropy"])
    scale = p["noise"] + 1.0 + entropy_loss_mean
    return jnp.transpose(out[:O, :B]) * scale                        # (B, O)


# ---------------------------------------------------------------------------
# Pure-JAX reference (mirrors the PyTorch code, including the fancy gather).
# ---------------------------------------------------------------------------
def dtree_forward_ref(x, p):
    eps = 0.01
    B = x.shape[0]
    L = p["num_leaves"]
    O = p["out_dim"]
    depth = p["depth"]
    h = jnp.maximum(x @ p["w_pre"].T + p["b_pre"][:, 0], 0.0)
    hn = h / jnp.maximum(jnp.linalg.norm(h, axis=1, keepdims=True), 1e-12)
    right = hn @ p["w_nodes_n"].T                                    # (B, N)
    right_dist = (1.0 - right) / 2.0
    left_dist = 1.0 - right_dist
    all_indices = jnp.stack([right_dist.T, left_dist.T], axis=0)     # (2, N, B)
    indices, sides = build_routes(depth)
    probs = all_indices[sides, indices]                              # (L, depth+1, B)
    log_probs = jnp.log(jnp.clip(probs, eps, 1.0 - eps))
    leaves_log = jnp.sum(log_probs, axis=1)                          # (L, B)
    scaled = jnp.exp(leaves_log)
    entropy = -jnp.sum(scaled * leaves_log, axis=0)                  # (B,)
    entropy_loss = entropy / p["max_entropy"]
    results = (h @ p["w_leaf"].T + p["b_leaf"][:, 0]).reshape(B, L, O)
    results = results * (p["noise"] + 1.0 + entropy_loss.mean())
    s_w = scaled.T                                                   # (B, L)
    return (results * s_w[:, :, None]).sum(axis=1)                   # (B, O)


if __name__ == "__main__":
    B, D, O, DEPTH = 500, 32, 8, 2
    key = jax.random.PRNGKey(0)
    kx, kp = jax.random.split(key)
    x = jax.random.normal(kx, (B, D), jnp.float32)
    params = make_dtree((D,), O, DEPTH, kp)

    ref = dtree_forward_ref(x, params)

    # Multi-step grid (tile_b=256 -> 2 steps) exercises batch padding,
    # VMEM-resident weights and pipelined natural-layout x tiles.
    out = jax.block_until_ready(dtree_forward_pallas(x, params, tile_b=256))
    np.testing.assert_allclose(np.asarray(out), np.asarray(ref), atol=5e-4, rtol=5e-4)

    # Default tile-size path (single full-batch tile at this small B).
    out2 = jax.block_until_ready(dtree_forward_pallas(x, params))
    np.testing.assert_allclose(np.asarray(out2), np.asarray(ref), atol=5e-4, rtol=5e-4)

    print("KERNEL_OK")
</pallas_src>

<mosaic_0001>
module attributes {stable_mosaic.version = 11 : i64} {
  func.func @dtree_kernel(%arg0: i32, %arg1: memref<256x32xf32, #tpu.memory_space<vmem>>, %arg2: memref<33x32xf32, #tpu.memory_space<vmem>>, %arg3: memref<33x1xf32, #tpu.memory_space<vmem>>, %arg4: memref<80x33xf32, #tpu.memory_space<vmem>>, %arg5: memref<64x1xf32, #tpu.memory_space<vmem>>, %arg6: memref<9x256xf32, #tpu.memory_space<vmem>>) attributes {dimension_semantics = [#tpu.dimension_semantics<parallel>], iteration_bounds = array<i64: 2>, scalar_prefetch = 0 : i64, scratch_operands = 0 : i64, tpu.core_type = #tpu.core_type<tc>, window_params = [{transform_indices = @transform_0, window_bounds = array<i64: 256, 32>}, {pipeline_mode = #tpu.pipeline_mode<synchronous>, transform_indices = @transform_1, window_bounds = array<i64: 33, 32>}, {pipeline_mode = #tpu.pipeline_mode<synchronous>, transform_indices = @transform_2, window_bounds = array<i64: 33, 1>}, {pipeline_mode = #tpu.pipeline_mode<synchronous>, transform_indices = @transform_3, window_bounds = array<i64: 80, 33>}, {pipeline_mode = #tpu.pipeline_mode<synchronous>, transform_indices = @transform_4, window_bounds = array<i64: 64, 1>}, {transform_indices = @transform_5, window_bounds = array<i64: 9, 256>}]} {
    %c0 = arith.constant 0 : index
    %c0_0 = arith.constant 0 : index
    %0 = vector.load %arg1[%c0, %c0_0] : memref<256x32xf32, #tpu.memory_space<vmem>>, vector<256x32xf32>
    %c0_1 = arith.constant 0 : index
    %c0_2 = arith.constant 0 : index
    %1 = vector.load %arg2[%c0_1, %c0_2] : memref<33x32xf32, #tpu.memory_space<vmem>>, vector<33x32xf32>
    %cst = arith.constant dense<0.000000e+00> : vector<33x256xf32>
    %2 = tpu.matmul %1, %0, %cst {dimension_numbers = #tpu.dot_dimension_numbers<[1], [1], [0], [0], [0, 0, 1, 0], [], []>} : vector<33x32xf32>, vector<256x32xf32>, vector<33x256xf32> -> vector<33x256xf32>
    %c0_3 = arith.constant 0 : index
    %c0_4 = arith.constant 0 : index
    %3 = vector.load %arg3[%c0_3, %c0_4] : memref<33x1xf32, #tpu.memory_space<vmem>>, vector<33x1xf32>
    %4 = vector.broadcast %3 : vector<33x1xf32> to vector<33x256xf32>
    %5 = arith.addf %2, %4 : vector<33x256xf32>
    %cst_5 = arith.constant 0.000000e+00 : f32
    %6 = vector.broadcast %cst_5 : f32 to vector<33x256xf32>
    %7 = arith.maximumf %5, %6 : vector<33x256xf32>
    %8 = arith.mulf %7, %7 : vector<33x256xf32>
    %cst_6 = arith.constant dense<0.000000e+00> : vector<256xf32>
    %9 = vector.multi_reduction <add>, %8, %cst_6 [0] : vector<33x256xf32> to vector<256xf32>
    %10 = vector.shape_cast %9 : vector<256xf32> to vector<1x256xf32>
    %cst_7 = arith.constant 1.000000e-24 : f32
    %11 = vector.broadcast %cst_7 : f32 to vector<1x256xf32>
    %12 = arith.maximumf %10, %11 : vector<1x256xf32>
    %13 = math.rsqrt %12 : vector<1x256xf32>
    %c0_8 = arith.constant 0 : index
    %c0_9 = arith.constant 0 : index
    %14 = vector.load %arg4[%c0_8, %c0_9] : memref<80x33xf32, #tpu.memory_space<vmem>>, vector<80x33xf32>
    %cst_10 = arith.constant dense<0.000000e+00> : vector<80x256xf32>
    %15 = tpu.matmul %14, %7, %cst_10 {dimension_numbers = #tpu.dot_dimension_numbers<[1], [0], [0], [1], [0, 0, 1, 1], [], []>} : vector<80x33xf32>, vector<33x256xf32>, vector<80x256xf32> -> vector<80x256xf32>
    %16 = vector.extract_strided_slice %15 {offsets = [0, 0], sizes = [16, 256], strides = [1, 1]} : vector<80x256xf32> to vector<16x256xf32>
    %17 = vector.broadcast %13 : vector<1x256xf32> to vector<16x256xf32>
    %18 = arith.mulf %16, %17 : vector<16x256xf32>
    %19 = vector.extract_strided_slice %15 {offsets = [16, 0], sizes = [64, 256], strides = [1, 1]} : vector<80x256xf32> to vector<64x256xf32>
    %c0_11 = arith.constant 0 : index
    %c0_12 = arith.constant 0 : index
    %20 = vector.load %arg5[%c0_11, %c0_12] : memref<64x1xf32, #tpu.memory_space<vmem>>, vector<64x1xf32>
    %21 = vector.broadcast %20 : vector<64x1xf32> to vector<64x256xf32>
    %22 = arith.addf %19, %21 : vector<64x256xf32>
    %cst_13 = arith.constant 1.000000e+00 : f32
    %23 = vector.broadcast %cst_13 : f32 to vector<16x256xf32>
    %24 = arith.subf %23, %18 : vector<16x256xf32>
    %cst_14 = arith.constant 5.000000e-01 : f32
    %25 = vector.broadcast %cst_14 : f32 to vector<16x256xf32>
    %26 = arith.mulf %24, %25 : vector<16x256xf32>
    %cst_15 = arith.constant 0.00999999977 : f32
    %cst_16 = arith.constant 9.900000e-01 : f32
    %27 = vector.broadcast %cst_15 : f32 to vector<16x256xf32>
    %28 = arith.maximumf %27, %26 : vector<16x256xf32>
    %29 = vector.broadcast %cst_16 : f32 to vector<16x256xf32>
    %30 = arith.minimumf %29, %28 : vector<16x256xf32>
    %31 = math.log %30 : vector<16x256xf32>
    %32 = vector.extract_strided_slice %31 {offsets = [7, 0], sizes = [1, 256], strides = [1, 1]} : vector<16x256xf32> to vector<1x256xf32>
    %33 = vector.extract_strided_slice %31 {offsets = [8, 0], sizes = [1, 256], strides = [1, 1]} : vector<16x256xf32> to vector<1x256xf32>
    %34 = arith.addf %32, %33 : vector<1x256xf32>
    %35 = vector.extract_strided_slice %31 {offsets = [10, 0], sizes = [1, 256], strides = [1, 1]} : vector<16x256xf32> to vector<1x256xf32>
    %36 = arith.addf %34, %35 : vector<1x256xf32>
    %37 = math.exp %36 : vector<1x256xf32>
    %38 = arith.mulf %37, %36 : vector<1x256xf32>
    %39 = vector.extract_strided_slice %22 {offsets = [0, 0], sizes = [8, 256], strides = [1, 1]} : vector<64x256xf32> to vector<8x256xf32>
    %40 = vector.broadcast %37 : vector<1x256xf32> to vector<8x256xf32>
    %41 = arith.mulf %40, %39 : vector<8x256xf32>
    %42 = vector.extract_strided_slice %31 {offsets = [7, 0], sizes = [1, 256], strides = [1, 1]} : vector<16x256xf32> to vector<1x256xf32>
    %43 = vector.extract_strided_slice %31 {offsets = [8, 0], sizes = [1, 256], strides = [1, 1]} : vector<16x256xf32> to vector<1x256xf32>
    %44 = arith.addf %42, %43 : vector<1x256xf32>
    %45 = vector.extract_strided_slice %31 {offsets = [3, 0], sizes = [1, 256], strides = [1, 1]} : vector<16x256xf32> to vector<1x256xf32>
    %46 = arith.addf %44, %45 : vector<1x256xf32>
    %47 = math.exp %46 : vector<1x256xf32>
    %48 = arith.mulf %47, %46 : vector<1x256xf32>
    %49 = arith.addf %38, %48 : vector<1x256xf32>
    %50 = vector.extract_strided_slice %22 {offsets = [8, 0], sizes = [8, 256], strides = [1, 1]} : vector<64x256xf32> to vector<8x256xf32>
    %51 = vector.broadcast %47 : vector<1x256xf32> to vector<8x256xf32>
    %52 = arith.mulf %51, %50 : vector<8x256xf32>
    %53 = arith.addf %41, %52 : vector<8x256xf32>
    %54 = vector.extract_strided_slice %31 {offsets = [7, 0], sizes = [1, 256], strides = [1, 1]} : vector<16x256xf32> to vector<1x256xf32>
    %55 = vector.extract_strided_slice %31 {offsets = [1, 0], sizes = [1, 256], strides = [1, 1]} : vector<16x256xf32> to vector<1x256xf32>
    %56 = arith.addf %54, %55 : vector<1x256xf32>
    %57 = vector.extract_strided_slice %31 {offsets = [11, 0], sizes = [1, 256], strides = [1, 1]} : vector<16x256xf32> to vector<1x256xf32>
    %58 = arith.addf %56, %57 : vector<1x256xf32>
    %59 = math.exp %58 : vector<1x256xf32>
    %60 = arith.mulf %59, %58 : vector<1x256xf32>
    %61 = arith.addf %49, %60 : vector<1x256xf32>
    %62 = vector.extract_strided_slice %22 {offsets = [16, 0], sizes = [8, 256], strides = [1, 1]} : vector<64x256xf32> to vector<8x256xf32>
    %63 = vector.broadcast %59 : vector<1x256xf32> to vector<8x256xf32>
    %64 = arith.mulf %63, %62 : vector<8x256xf32>
    %65 = arith.addf %53, %64 : vector<8x256xf32>
    %66 = vector.extract_strided_slice %31 {offsets = [7, 0], sizes = [1, 256], strides = [1, 1]} : vector<16x256xf32> to vector<1x256xf32>
    %67 = vector.extract_strided_slice %31 {offsets = [1, 0], sizes = [1, 256], strides = [1, 1]} : vector<16x256xf32> to vector<1x256xf32>
    %68 = arith.addf %66, %67 : vector<1x256xf32>
    %69 = vector.extract_strided_slice %31 {offsets = [4, 0], sizes = [1, 256], strides = [1, 1]} : vector<16x256xf32> to vector<1x256xf32>
    %70 = arith.addf %68, %69 : vector<1x256xf32>
    %71 = math.exp %70 : vector<1x256xf32>
    %72 = arith.mulf %71, %70 : vector<1x256xf32>
    %73 = arith.addf %61, %72 : vector<1x256xf32>
    %74 = vector.extract_strided_slice %22 {offsets = [24, 0], sizes = [8, 256], strides = [1, 1]} : vector<64x256xf32> to vector<8x256xf32>
    %75 = vector.broadcast %71 : vector<1x256xf32> to vector<8x256xf32>
    %76 = arith.mulf %75, %74 : vector<8x256xf32>
    %77 = arith.addf %65, %76 : vector<8x256xf32>
    %78 = vector.extract_strided_slice %31 {offsets = [0, 0], sizes = [1, 256], strides = [1, 1]} : vector<16x256xf32> to vector<1x256xf32>
    %79 = vector.extract_strided_slice %31 {offsets = [9, 0], sizes = [1, 256], strides = [1, 1]} : vector<16x256xf32> to vector<1x256xf32>
    %80 = arith.addf %78, %79 : vector<1x256xf32>
    %81 = vector.extract_strided_slice %31 {offsets = [12, 0], sizes = [1, 256], strides = [1, 1]} : vector<16x256xf32> to vector<1x256xf32>
    %82 = arith.addf %80, %81 : vector<1x256xf32>
    %83 = math.exp %82 : vector<1x256xf32>
    %84 = arith.mulf %83, %82 : vector<1x256xf32>
    %85 = arith.addf %73, %84 : vector<1x256xf32>
    %86 = vector.extract_strided_slice %22 {offsets = [32, 0], sizes = [8, 256], strides = [1, 1]} : vector<64x256xf32> to vector<8x256xf32>
    %87 = vector.broadcast %83 : vector<1x256xf32> to vector<8x256xf32>
    %88 = arith.mulf %87, %86 : vector<8x256xf32>
    %89 = arith.addf %77, %88 : vector<8x256xf32>
    %90 = vector.extract_strided_slice %31 {offsets = [0, 0], sizes = [1, 256], strides = [1, 1]} : vector<16x256xf32> to vector<1x256xf32>
    %91 = vector.extract_strided_slice %31 {offsets = [9, 0], sizes = [1, 256], strides = [1, 1]} : vector<16x256xf32> to vector<1x256xf32>
    %92 = arith.addf %90, %91 : vector<1x256xf32>
    %93 = vector.extract_strided_slice %31 {offsets = [5, 0], sizes = [1, 256], strides = [1, 1]} : vector<16x256xf32> to vector<1x256xf32>
    %94 = arith.addf %92, %93 : vector<1x256xf32>
    %95 = math.exp %94 : vector<1x256xf32>
    %96 = arith.mulf %95, %94 : vector<1x256xf32>
    %97 = arith.addf %85, %96 : vector<1x256xf32>
    %98 = vector.extract_strided_slice %22 {offsets = [40, 0], sizes = [8, 256], strides = [1, 1]} : vector<64x256xf32> to vector<8x256xf32>
    %99 = vector.broadcast %95 : vector<1x256xf32> to vector<8x256xf32>
    %100 = arith.mulf %99, %98 : vector<8x256xf32>
    %101 = arith.addf %89, %100 : vector<8x256xf32>
    %102 = vector.extract_strided_slice %31 {offsets = [0, 0], sizes = [1, 256], strides = [1, 1]} : vector<16x256xf32> to vector<1x256xf32>
    %103 = vector.extract_strided_slice %31 {offsets = [2, 0], sizes = [1, 256], strides = [1, 1]} : vector<16x256xf32> to vector<1x256xf32>
    %104 = arith.addf %102, %103 : vector<1x256xf32>
    %105 = vector.extract_strided_slice %31 {offsets = [13, 0], sizes = [1, 256], strides = [1, 1]} : vector<16x256xf32> to vector<1x256xf32>
    %106 = arith.addf %104, %105 : vector<1x256xf32>
    %107 = math.exp %106 : vector<1x256xf32>
    %108 = arith.mulf %107, %106 : vector<1x256xf32>
    %109 = arith.addf %97, %108 : vector<1x256xf32>
    %110 = vector.extract_strided_slice %22 {offsets = [48, 0], sizes = [8, 256], strides = [1, 1]} : vector<64x256xf32> to vector<8x256xf32>
    %111 = vector.broadcast %107 : vector<1x256xf32> to vector<8x256xf32>
    %112 = arith.mulf %111, %110 : vector<8x256xf32>
    %113 = arith.addf %101, %112 : vector<8x256xf32>
    %114 = vector.extract_strided_slice %31 {offsets = [0, 0], sizes = [1, 256], strides = [1, 1]} : vector<16x256xf32> to vector<1x256xf32>
    %115 = vector.extract_strided_slice %31 {offsets = [2, 0], sizes = [1, 256], strides = [1, 1]} : vector<16x256xf32> to vector<1x256xf32>
    %116 = arith.addf %114, %115 : vector<1x256xf32>
    %117 = vector.extract_strided_slice %31 {offsets = [6, 0], sizes = [1, 256], strides = [1, 1]} : vector<16x256xf32> to vector<1x256xf32>
    %118 = arith.addf %116, %117 : vector<1x256xf32>
    %119 = math.exp %118 : vector<1x256xf32>
    %120 = arith.mulf %119, %118 : vector<1x256xf32>
    %121 = arith.addf %109, %120 : vector<1x256xf32>
    %122 = vector.extract_strided_slice %22 {offsets = [56, 0], sizes = [8, 256], strides = [1, 1]} : vector<64x256xf32> to vector<8x256xf32>
    %123 = vector.broadcast %119 : vector<1x256xf32> to vector<8x256xf32>
    %124 = arith.mulf %123, %122 : vector<8x256xf32>
    %125 = arith.addf %113, %124 : vector<8x256xf32>
    %c0_17 = arith.constant 0 : index
    %c0_18 = arith.constant 0 : index
    %126 = vector.load %arg6[%c0_17, %c0_18] : memref<9x256xf32, #tpu.memory_space<vmem>>, vector<8x256xf32>
    tpu.vector_store %arg6[%c0_17, %c0_18], %125 {strides = array<i32>} : memref<9x256xf32, #tpu.memory_space<vmem>>, vector<8x256xf32>,
    %cst_19 = arith.constant 0.000000e+00 : f32
    %127 = vector.broadcast %cst_19 : f32 to vector<1x256xf32>
    %128 = arith.subf %127, %121 : vector<1x256xf32>
    %c8 = arith.constant 8 : index
    %c0_20 = arith.constant 0 : index
    %129 = vector.load %arg6[%c8, %c0_20] : memref<9x256xf32, #tpu.memory_space<vmem>>, vector<1x256xf32>
    tpu.vector_store %arg6[%c8, %c0_20], %128 {strides = array<i32>} : memref<9x256xf32, #tpu.memory_space<vmem>>, vector<1x256xf32>,
    return
  }
  func.func @transform_0(%arg0: i32) -> (i32, i32) {
    %c0_i32 = arith.constant 0 : i32
    %c0_i32_0 = arith.constant 0 : i32
    return %arg0, %c0_i32 : i32, i32
  }
  func.func @transform_1(%arg0: i32) -> (i32, i32) {
    %c0_i32 = arith.constant 0 : i32
    %c0_i32_0 = arith.constant 0 : i32
    %c0_i32_1 = arith.constant 0 : i32
    return %c0_i32, %c0_i32_0 : i32, i32
  }
  func.func @transform_2(%arg0: i32) -> (i32, i32) {
    %c0_i32 = arith.constant 0 : i32
    %c0_i32_0 = arith.constant 0 : i32
    %c0_i32_1 = arith.constant 0 : i32
    return %c0_i32, %c0_i32_0 : i32, i32
  }
  func.func @transform_3(%arg0: i32) -> (i32, i32) {
    %c0_i32 = arith.constant 0 : i32
    %c0_i32_0 = arith.constant 0 : i32
    %c0_i32_1 = arith.constant 0 : i32
    return %c0_i32, %c0_i32_0 : i32, i32
  }
  func.func @transform_4(%arg0: i32) -> (i32, i32) {
    %c0_i32 = arith.constant 0 : i32
    %c0_i32_0 = arith.constant 0 : i32
    %c0_i32_1 = arith.constant 0 : i32
    return %c0_i32, %c0_i32_0 : i32, i32
  }
  func.func @transform_5(%arg0: i32) -> (i32, i32) {
    %c0_i32 = arith.constant 0 : i32
    %c0_i32_0 = arith.constant 0 : i32
    return %c0_i32, %arg0 : i32, i32
  }
}

</mosaic_0001>

<bundles_post_ra>
// kernel: tpu_custom_call.1
= control target key start
LH: loop header
LB: loop body
LE: loop exit
PB: predicated region body
PF: predicated region fallthrough
CT: control target
= control target key end

     0   :  { %10 = vsyncpa [#allocation3], 0  ;;  %s1947_s0 = inlined_call_operand.vmem [shape: f32[512,32], index: 0, kind: input, shape index: {}]   ;;  %s1948_s1 = inlined_call_operand.vmem [shape: f32[33,32], index: 1, kind: input, shape index: {}]   ;;  %s1949_s2 = inlined_call_operand.vmem [shape: f32[33,1], index: 2, kind: input, shape index: {}]   ;;  %s1950_s3 = inlined_call_operand.vmem [shape: f32[80,33], index: 3, kind: input, shape index: {}]   ;;  %s1951_s4 = inlined_call_operand.vmem [shape: f32[64,1], index: 4, kind: input, shape index: {}]   ;;  %s1952_s5 = inlined_call_operand.hbm [shape: f32[9,512], index: 5, kind: output, shape index: {}]  }
   0x1   :  { %12 = vsyncpa [#allocation3 + $0x1], 0  ;;  %s1449_s18 = smov 0   ;;  %s1451_s19 = smov 0  }
   0x2   :  { %s1453_s20 = smov 0   ;;  %s1455_s21 = smov 0  }
   0x3 LB: > { %s1470_s22 = sadd.s32 4294967295, %s1410_s21   ;;  %s1154_s23 = sadd.s32 4294967294, %s1410_s21   ;;  %s1410_s21 = sphi %s1455_s21, %s1958_s21   ;;  %s1406_s20 = sphi %s1453_s20, %s1957_s20   ;;  %s1402_s19 = sphi %s1451_s19, %s1956_s19   ;;  %s1398_s18 = sphi %s1449_s18, %s1955_s18  }
   0x4   : > { %s1474_s24 = sadd.s32 1, %s1410_s21   ;;  %s135_s25 = sadd.s32 1, %s1406_s20 }
   0x5   : > { %s132_s26 = ssub.s32 %s1410_s21, %s1474_s24  ;;  %p145_p0 = scmp.ne.s32.totalorder %s1406_s20, %s1402_s19 }
   0x6   : > { %p133_p1 = scmp.eq.s32.totalorder %s132_s26, 0  ;;  %p146_p2 = scmp.eq.s32.totalorder %s1470_s22, 1 }
   0x7   : > { %p151_p3 = scmp.ne.s32.totalorder %s1402_s19, %s1398_s18  ;;  %p152_p4 = scmp.eq.s32.totalorder %s1154_s23, 1 }
   0x8   : > { %s1485_s27 = scalar_select %p133_p1, %s1406_s20, %s135_s25  }
   0x9   : > { %p1487_p5 = por %p146_p2, %p145_p0  ;;  %p1491_p6 = por %p152_p4, %p151_p3 }
   0xa   : > { %p1157_p7 = scmp.ge.s32.totalorder %s1410_s21, 1  ;;  %p191_p8 = scmp.lt.s32.totalorder %s1410_s21, 3 }
   0xc   : > { %p192_p9 = pnand %p1157_p7, %p191_p8 }
   0xd   : > { %s1159_s30 = sshll.u32 (!%p192_p9), %s1470_s22, 5  ;;  %s216_s23 = sand.u32 (!%p192_p9), 1, %s1402_s19  }
   0xe   : > { %195 = sbr.rel (%p192_p9) target bundleno = 609 (0x261), region = 40  ;;  %p220_p10 = scmp.lt.s32.totalorder (!%p192_p9), %s1159_s30, 63 }
   0xf   : > { %s1158_s26 = sshll.u32 (!%p192_p9), %s216_s23, 5  ;;  %s1216_s7 = sshll.u32 (!%p192_p9), %s1470_s22, 8 }
  0x10   : > { %s218_s6 = scalar_lea.vmem (!%p192_p9), [#allocation2], %s1158_s26  ;;  %s1903_s10 = scalar_lea.hbm (!%p192_p9), %s1952_s5, %s1216_s7 }
  0x11   : > { %s1415_s22 = smov (!%p192_p9), [#allocation2]  }
  0x12   : > { %s1354_s12 = sshll.u32 (!%p192_p9), %s1415_s22, 4  ;;  %s1355_s12 = int_to_ptr.vmem [resolvable:$false] %s1354_s12 }
  0x13   : > { %vm293_vm0 = vcmask 261120   ;;  %v1501_v0 = vld [vmem:[%s1948_s1] sm:$0xff]  ;;  %v1412_v1 = vmov 0   ;;  %v265_v3 = vld [vmem:[%s1949_s2 + $0x10] sm:$0xff]  ;;  %s1960_s30 = smov (!%p220_p10, %s1159_s30), 63  ;;  %v266_v4 = vld [vmem:[%s1949_s2 + $0x18] sm:$0xff] }
  0x14   : > { %1249 = vmatprep.mubr.msk.f32.mxu0 %vm293_vm0, %v1501_v0  ;;  %1304 = vset.pattern.permute.xlu0 %v1412_v1  ;;  %v267_v2 = vld [vmem:[%s1949_s2 + $0x20] sm:$0x1]  ;;  %v264_v5 = vld [vmem:[%s1949_s2 + $0x8] sm:$0xff]  ;;  %s1160_s16 = sshll.u32 %s1960_s30, 3  ;;  %v725_v14 = vld [vmem:[%s1951_s4 + $0x10] sm:$0xff]  ;;  %v1413_v51 = vmov 0.0  }
  0x15   : > { %290 = vperm.xlu0 %1304, %v267_v2   ;;  %1305 = vset.pattern.permute.xlu1 %v1412_v1  ;;  %s1520_s25 = scalar_lea.vmem %s1947_s0, %s1160_s16  ;;  %v263_v6 = vld [vmem:[%s1949_s2] sm:$0xff]  ;;  %v724_v13 = vld [vmem:[%s1951_s4 + $0x8] sm:$0xff]  ;;  %v726_v17 = vld [vmem:[%s1951_s4 + $0x18] sm:$0xff]  ;;  %vm523_vm1 = vcmask 1040384   ;;  %vm557_vm2 = vcmask 269312   ;;  %s1092_s30 = sshll.u32 %s218_s6, 4  ;;  %s1897_s30 = int_to_ptr.vmem [resolvable:$true] %s1092_s30 }
  0x16   : > { %280 = vperm.xlu1 %1305, %v265_v3   ;;  %v257_v7 = vld [vmem:[%s1520_s25 + $0xf8] sm:$0xff]  ;;  %v256_v9 = vld [vmem:[%s1520_s25 + $0xf0] sm:$0xff]  ;;  %v723_v10 = vld [vmem:[%s1951_s4] sm:$0xff]  ;;  %658 = vmatprep.mubr.f32.mxu1 %v1413_v51  ;;  %s1350_s11 = scalar_lea.vmem %s1897_s30, 512  ;;  %s1356_s13 = scalar_lea.vmem %s1355_s12, 1024 }
  0x17   : > { %v241_v8 = vld [vmem:[%s1520_s25 + $0x78] sm:$0xff]  ;;  %1217 = vmatprep.subr.msk.mxu0 %vm293_vm0, %v257_v7  ;;  %v240_v11 = vld [vmem:[%s1520_s25 + $0x70] sm:$0xff]  ;;  %v255_v12 = vld [vmem:[%s1520_s25 + $0xe8] sm:$0xff]  ;;  %p1351_p11 = scmp.ne.s32.totalorder %s1897_s30, %s1350_s11  ;;  %p1357_p0 = scmp.lt.s32.totalorder %s1897_s30, %s1355_s12 }
  0x18   : > { %1218 = vmatpush3.xpose.msk.msra.mxu0 %vm293_vm0, %v241_v8  ;;  %v239_v15 = vld [vmem:[%s1520_s25 + $0x68] sm:$0xff]  ;;  %v254_v16 = vld [vmem:[%s1520_s25 + $0xe0] sm:$0xff]  ;;  %v253_v20 = vld [vmem:[%s1520_s25 + $0xd8] sm:$0xff]  ;;  %p1358_p1 = scmp.lt.s32.totalorder %s1356_s13, %s1350_s11 }
  0x19   : > { %285 = vperm.xlu0 %1304, %v266_v4   ;;  %1219 = vmatprep.subr.msk.mxu0 %vm293_vm0, %v256_v9  ;;  %v727_v18 = vld [vmem:[%s1951_s4 + $0x20] sm:$0xff]  ;;  %v728_v21 = vld [vmem:[%s1951_s4 + $0x28] sm:$0xff]  ;;  %v729_v22 = vld [vmem:[%s1951_s4 + $0x30] sm:$0xff]  ;;  %p1352_p12 = pnand %p1351_p11, %p1487_p5 }
  0x1a   : > { %275 = vperm.xlu1 %1305, %v264_v5   ;;  %v238_v19 = vld [vmem:[%s1520_s25 + $0x60] sm:$0xff]  ;;  %v237_v23 = vld [vmem:[%s1520_s25 + $0x58] sm:$0xff]  ;;  %v252_v24 = vld [vmem:[%s1520_s25 + $0xd0] sm:$0xff]  ;;  %p1359_p2 = por %p1358_p1, %p1357_p0 }
  0x1b   : > { %v730_v25 = vld [vmem:[%s1951_s4 + $0x38] sm:$0xff]  ;;  %v236_v26 = vld [vmem:[%s1520_s25 + $0x50] sm:$0xff]  ;;  %v251_v27 = vld [vmem:[%s1520_s25 + $0xc8] sm:$0xff]  ;;  %p1353_p13 = pneg %p1352_p12 }
  0x1c   : > { %1220 = vmatpush3.xpose.msk.msra.mxu0 %vm293_vm0, %v240_v11  ;;  %v235_v28 = vld [vmem:[%s1520_s25 + $0x48] sm:$0xff]  ;;  %v250_v29 = vld [vmem:[%s1520_s25 + $0xc0] sm:$0xff]  ;;  %v249_v31 = vld [vmem:[%s1520_s25 + $0xb8] sm:$0xff] }
  0x1d   : > { %270 = vperm.xlu0 %1304, %v263_v6   ;;  %1221 = vmatprep.subr.msk.mxu0 %vm293_vm0, %v255_v12  ;;  %v234_v30 = vld [vmem:[%s1520_s25 + $0x40] sm:$0xff]  ;;  %v233_v32 = vld [vmem:[%s1520_s25 + $0x38] sm:$0xff]  ;;  %v248_v33 = vld [vmem:[%s1520_s25 + $0xb0] sm:$0xff]  ;;  %p1360_p3 = pnand %p1359_p2, %p1353_p13 }
  0x1e   : > { %733 = vperm.xlu1 %1305, %v723_v10   ;;  %v232_v34 = vld [vmem:[%s1520_s25 + $0x30] sm:$0xff]  ;;  %v247_v35 = vld [vmem:[%s1520_s25 + $0xa8] sm:$0xff]  ;;  %v246_v37 = vld [vmem:[%s1520_s25 + $0xa0] sm:$0xff] }
  0x1f   : > { %v231_v36 = vld [vmem:[%s1520_s25 + $0x28] sm:$0xff]  ;;  %v230_v38 = vld [vmem:[%s1520_s25 + $0x20] sm:$0xff]  ;;  %v245_v39 = vld [vmem:[%s1520_s25 + $0x98] sm:$0xff] }
  0x20   : > { %1222 = vmatpush3.xpose.msk.msra.mxu0 %vm293_vm0, %v239_v15  ;;  %v229_v40 = vld [vmem:[%s1520_s25 + $0x18] sm:$0xff]  ;;  %v244_v41 = vld [vmem:[%s1520_s25 + $0x90] sm:$0xff]  ;;  %v243_v43 = vld [vmem:[%s1520_s25 + $0x88] sm:$0xff] }
  0x21   : > { %738 = vperm.xlu0 %1304, %v724_v13   ;;  %1223 = vmatprep.subr.msk.mxu0 %vm293_vm0, %v254_v16  ;;  %v228_v42 = vld [vmem:[%s1520_s25 + $0x10] sm:$0xff]  ;;  %v227_v44 = vld [vmem:[%s1520_s25 + $0x8] sm:$0xff]  ;;  %v242_v45 = vld [vmem:[%s1520_s25 + $0x80] sm:$0xff] }
  0x22   : > { %743 = vperm.xlu1 %1305, %v725_v14   ;;  %v226_v46 = vld [vmem:[%s1520_s25] sm:$0xff]  ;;  %v259_v47 = vld [vmem:[%s1948_s1 + $0x8] sm:$0xff]  ;;  %v260_v48 = vld [vmem:[%s1948_s1 + $0x10] sm:$0xff]  ;;  %s1907_s25 = scalar_lea.sflag [#allocation3], %s216_s23 }
  0x23   : > { %v261_v49 = vld [vmem:[%s1948_s1 + $0x18] sm:$0xff]  ;;  %v262_v50 = vld [vmem:[%s1948_s1 + $0x20] sm:$0x1] }
  0x24   : > { %1224 = vmatpush3.xpose.msk.msra.mxu0 %vm293_vm0, %v238_v19 }
  0x25   : > { %748 = vperm.xlu0 %1304, %v726_v17   ;;  %1225 = vmatprep.subr.msk.mxu0 %vm293_vm0, %v253_v20 }
  0x26   : > { %753 = vperm.xlu1 %1305, %v727_v18  }
  0x28   : > { %1226 = vmatpush3.xpose.msk.msra.mxu0 %vm293_vm0, %v237_v23 }
  0x29   : > { %758 = vperm.xlu0 %1304, %v728_v21   ;;  %1227 = vmatprep.subr.msk.mxu0 %vm293_vm0, %v252_v24 }
  0x2a   : > { %763 = vperm.xlu1 %1305, %v729_v22  }
  0x2c   : > { %1228 = vmatpush3.xpose.msk.msra.mxu0 %vm293_vm0, %v236_v26 }
  0x2d   : > { %768 = vperm.xlu0 %1304, %v730_v25   ;;  %1229 = vmatprep.subr.msk.mxu0 %vm293_vm0, %v251_v27 }
  0x30   : > { %1230 = vmatpush3.xpose.msk.msra.mxu0 %vm293_vm0, %v235_v28 }
  0x31   : > { %1231 = vmatprep.subr.msk.mxu0 %vm293_vm0, %v250_v29 }
  0x34   : > { %1232 = vmatpush3.xpose.msk.msra.mxu0 %vm293_vm0, %v234_v30 }
  0x35   : > { %1233 = vmatprep.subr.msk.mxu0 %vm293_vm0, %v249_v31 }
  0x38   : > { %1234 = vmatpush3.xpose.msk.msra.mxu0 %vm293_vm0, %v233_v32 }
  0x39   : > { %1235 = vmatprep.subr.msk.mxu0 %vm293_vm0, %v248_v33 }
  0x3c   : > { %1236 = vmatpush3.xpose.msk.msra.mxu0 %vm293_vm0, %v232_v34 }
  0x3d   : > { %1237 = vmatprep.subr.msk.mxu0 %vm293_vm0, %v247_v35 }
  0x40   : > { %1238 = vmatpush3.xpose.msk.msra.mxu0 %vm293_vm0, %v231_v36 }
  0x41   : > { %1239 = vmatprep.subr.msk.mxu0 %vm293_vm0, %v246_v37 }
  0x44   : > { %1240 = vmatpush3.xpose.msk.msra.mxu0 %vm293_vm0, %v230_v38 }
  0x45   : > { %1241 = vmatprep.subr.msk.mxu0 %vm293_vm0, %v245_v39 }
  0x48   : > { %1242 = vmatpush3.xpose.msk.msra.mxu0 %vm293_vm0, %v229_v40 }
  0x49   : > { %1243 = vmatprep.subr.msk.mxu0 %vm293_vm0, %v244_v41 }
  0x4c   : > { %1244 = vmatpush3.xpose.msk.msra.mxu0 %vm293_vm0, %v228_v42 }
  0x4d   : > { %1245 = vmatprep.subr.msk.mxu0 %vm293_vm0, %v243_v43  ;;  %v547_v43 = vld [vmem:[%s1950_s3] sm:$0xff] }
  0x50   : > { %1246 = vmatpush3.xpose.msk.msra.mxu0 %vm293_vm0, %v227_v44  ;;  %v548_v44 = vld [vmem:[%s1950_s3 + $0x8] sm:$0xff] }
  0x51   : > { %1247 = vmatprep.subr.msk.mxu0 %vm293_vm0, %v242_v45  ;;  %v549_v45 = vld [vmem:[%s1950_s3 + $0x10] sm:$0xff] }
  0x54   : > { %1248 = vmatpush3.xpose.msk.msra.mxu0 %vm293_vm0, %v226_v46  ;;  %v550_v46 = vld [vmem:[%s1950_s3 + $0x18] sm:$0xff] }
  0x57   : > { %1250 = vmatmul.mubr.msk.f32.vlgmr.msra.gmra.mxu0 %vm293_vm0, %v1501_v0 }
  0x58   : > { %1251 = vmatprep.mubr.msk.f32.mxu0 %vm293_vm0, %v259_v47 }
  0x5b   : > { %1252 = vmatmul.mubr.msk.f32.gmra.mxu0 %vm293_vm0, %v259_v47  ;;  %v551_v47 = vld [vmem:[%s1950_s3 + $0x20] sm:$0xff] }
  0x5c   : > { %1253 = vmatprep.mubr.msk.f32.mxu0 %vm293_vm0, %v260_v48 }
  0x5f   : > { %1254 = vmatmul.mubr.msk.f32.gmra.mxu0 %vm293_vm0, %v260_v48  ;;  %v552_v48 = vld [vmem:[%s1950_s3 + $0x28] sm:$0xff] }
  0x60   : > { %1255 = vmatprep.mubr.msk.f32.mxu0 %vm293_vm0, %v261_v49 }
  0x63   : > { %1256 = vmatmul.mubr.msk.f32.gmra.mxu0 %vm293_vm0, %v261_v49  ;;  %v553_v49 = vld [vmem:[%s1950_s3 + $0x30] sm:$0xff] }
  0x64   : > { %1257 = vmatprep.mubr.msk.f32.mxu0 %vm293_vm0, %v262_v50 }
  0x67   : > { %1258 = vmatmul.mubr.msk.f32.gmra.mxu0 %vm293_vm0, %v262_v50  ;;  %v554_v50 = vld [vmem:[%s1950_s3 + $0x38] sm:$0xff] }
  0x90   : > { %v291_v52 = vpop.permute.xlu0 %290 }
  0x91   : > { %v281_v54 = vpop.permute.xlu1 %280 }
  0x94   : > { %v286_v53 = vpop.permute.xlu0 %285 }
  0x95   : > { %v276_v59 = vpop.permute.xlu1 %275 }
  0x98   : > { %v271_v55 = vpop.permute.xlu0 %270 }
 0x117   : > { %v471_v56 = vpop.f32.mrf.mxu0 }
 0x118   : > { %v472_v57 = vadd.f32 %v471_v56, %v271_v55 }
 0x119   : > { %v473_v58 = vpop.f32.mrf.mxu0 }
 0x11a   : > { %v474_v60 = vadd.f32 %v473_v58, %v271_v55  ;;  %v500_v62 = vmax.f32 %v472_v57, 0.0 }
 0x11b   : > { %v477_v61 = vpop.f32.mrf.mxu0 }
 0x11c   : > { %v478_v63 = vadd.f32 %v477_v61, %v276_v59  ;;  %v501_v0 = vmax.f32 %v474_v60, 0.0  ;;  %v510_v5 = vmul.f32 %v500_v62, %v500_v62 }
 0x11d   : > { %v479_v1 = vpop.f32.mrf.mxu0 }
 0x11e   : > { %v502_v2 = vmax.f32 %v478_v63, 0.0  ;;  %v480_v3 = vadd.f32 %v479_v1, %v276_v59  ;;  %v511_v9 = vmul.f32 %v501_v0, %v501_v0 }
 0x11f   : > { %v483_v4 = vpop.f32.mrf.mxu0 }
 0x120   : > { %v512_v6 = vmul.f32 %v502_v2, %v502_v2  ;;  %v503_v7 = vmax.f32 %v480_v3, 0.0  ;;  %v484_v8 = vadd.f32 %v483_v4, %v281_v54 }
 0x121   : > { %v485_v10 = vpop.f32.mrf.mxu0 }
 0x122   : > { %v520_v11 = vadd.f32 %v512_v6, %v510_v5  ;;  %v513_v12 = vmul.f32 %v503_v7, %v503_v7  ;;  %v504_v13 = vmax.f32 %v484_v8, 0.0  ;;  %v486_v14 = vadd.f32 %v485_v10, %v281_v54 }
 0x123   : > { %v489_v15 = vpop.f32.mrf.mxu0 }
 0x124   : > { %v532_v16 = vadd.f32 %v513_v12, %v511_v9  ;;  %v514_v17 = vmul.f32 %v504_v13, %v504_v13  ;;  %v505_v18 = vmax.f32 %v486_v14, 0.0  ;;  %v490_v19 = vadd.f32 %v489_v15, %v286_v53 }
 0x125   : > { %v491_v20 = vpop.f32.mrf.mxu0 }
 0x126   : > { %v521_v21 = vadd.f32 %v520_v11, %v514_v17  ;;  %v515_v22 = vmul.f32 %v505_v18, %v505_v18  ;;  %v506_v23 = vmax.f32 %v490_v19, 0.0  ;;  %v492_v24 = vadd.f32 %v491_v20, %v286_v53  ;;  %v556_v53 = vld [vmem:[%s1950_s3 + $0x48] sm:$0xff] }
 0x127   : > { %v495_v25 = vpop.f32.mrf.mxu0 }
 0x128   : > { %v533_v26 = vadd.f32 %v532_v16, %v515_v22  ;;  %v516_v27 = vmul.f32 %v506_v23, %v506_v23  ;;  %v507_v28 = vmax.f32 %v492_v24, 0.0  ;;  %v496_v29 = vadd.f32 %v495_v25, %v291_v52 }
 0x129   : > { %v497_v30 = vpop.f32.mrf.mxu0 }
 0x12a   : > { %v522_v31 = vadd.f32 %v521_v21, %v516_v27  ;;  %v517_v32 = vmul.f32 %v507_v28, %v507_v28  ;;  %v508_v33 = vmax.f32 %v496_v29, 0.0  ;;  %v498_v34 = vadd.f32 %v497_v30, %v291_v52  ;;  %v555_v52 = vld [vmem:[%s1950_s3 + $0x40] sm:$0xff] }
 0x12c   : > { %v534_v35 = vadd.f32 %v533_v26, %v517_v32  ;;  %v518_v36 = vmul.f32 %v508_v33, %v508_v33  ;;  %v509_v37 = vmax.f32 %v498_v34, 0.0 }
 0x12e   : > { %v519_v38 = vmul.f32 %v509_v37, %v509_v37  ;;  %v524_v39 = vsel %vm523_vm1, %v518_v36, 0.0  ;;  %1198 = vmatprep.subr.msk.mxu1 %vm523_vm1, %v509_v37 }
 0x12f   : > { %v525_v40 = vadd.f32 %v524_v39, %v522_v31  ;;  %1199 = vmatpush1.msk.msra.mxu1 %vm523_vm1, %v508_v33 }
 0x130   : > { %v535_v41 = vsel %vm523_vm1, %v519_v38, 0.0  ;;  %618 = vmatprep.subr.mxu1 %v507_v28 }
 0x131   : > { %v536_v42 = vadd.f32 %v535_v41, %v534_v35  ;;  %619 = vmatpush1.msra.mxu1 %v506_v23  ;;  %v526_v54 = vrot.slane %v525_v40, 4 }
 0x132   : > { %620 = vmatprep.subr.mxu1 %v505_v18 }
 0x133   : > { %621 = vmatpush1.msra.mxu1 %v504_v13  ;;  %v537_v55 = vrot.slane %v536_v42, 4  ;;  %v527_v56 = vadd.f32 %v526_v54, %v525_v40 }
 0x134   : > { %622 = vmatprep.subr.mxu1 %v503_v7 }
 0x135   : > { %623 = vmatpush1.msra.mxu1 %v502_v2  ;;  %v538_v57 = vadd.f32 %v537_v55, %v536_v42  ;;  %v528_v58 = vrot.slane %v527_v56, 2 }
 0x136   : > { %624 = vmatprep.subr.mxu1 %v501_v0 }
 0x137   : > { %625 = vmatpush1.msra.mxu1 %v500_v62  ;;  %v539_v59 = vrot.slane %v538_v57, 2  ;;  %v529_v60 = vadd.f32 %v528_v58, %v527_v56 }
 0x138   : > { %1200 = vmatmul.mubr.msk.f32.vlgmr.msra.gmra.mxu1 %vm557_vm2, %v547_v43 }
 0x139   : > { %664 = vmatprep.mubr.f32.mxu1 %v1413_v51  ;;  %v540_v61 = vadd.f32 %v539_v59, %v538_v57  ;;  %v530_v62 = vrot.slane %v529_v60, 1 }
 0x13b   : > { %v541_v63 = vrot.slane %v540_v61, 1  ;;  %v531_v0 = vadd.f32 %v530_v62, %v529_v60 }
 0x13c   : > { %1201 = vmatmul.mubr.msk.f32.gmra.mxu1 %vm557_vm2, %v548_v44 }
 0x13d   : > { %670 = vmatprep.mubr.f32.mxu1 %v1413_v51  ;;  %v542_v1 = vadd.f32 %v541_v63, %v540_v61  ;;  %v543_v2 = vmax.f32 %v531_v0, 1e-24 }
 0x13f   : > { %1306 = vrsqrt.f32 %v543_v2 }
 0x140   : > { %1202 = vmatmul.mubr.msk.f32.gmra.mxu1 %vm557_vm2, %v549_v45 }
 0x141   : > { %676 = vmatprep.mubr.f32.mxu1 %v1413_v51 }
 0x144   : > { %1203 = vmatmul.mubr.msk.f32.gmra.mxu1 %vm557_vm2, %v550_v46 }
 0x145   : > { %682 = vmatprep.mubr.f32.mxu1 %v1413_v51 }
 0x148   : > { %1204 = vmatmul.mubr.msk.f32.gmra.mxu1 %vm557_vm2, %v551_v47 }
 0x149   : > { %688 = vmatprep.mubr.f32.mxu1 %v1413_v51 }
 0x14c   : > { %1205 = vmatmul.mubr.msk.f32.gmra.mxu1 %vm557_vm2, %v552_v48  ;;  %v1307_v3 = vpop.eup %1306 }
 0x14d   : > { %694 = vmatprep.mubr.f32.mxu1 %v1413_v51 }
 0x150   : > { %1206 = vmatmul.mubr.msk.f32.gmra.mxu1 %vm557_vm2, %v553_v49 }
 0x151   : > { %700 = vmatprep.mubr.f32.mxu1 %v1413_v51 }
 0x154   : > { %1207 = vmatmul.mubr.msk.f32.gmra.mxu1 %vm557_vm2, %v554_v50 }
 0x155   : > { %706 = vmatprep.mubr.f32.mxu1 %v1413_v51 }
 0x158   : > { %1208 = vmatmul.mubr.msk.f32.gmra.mxu1 %vm557_vm2, %v555_v52 }
 0x159   : > { %712 = vmatprep.mubr.f32.mxu1 %v1413_v51  ;;  %v544_v51 = vmax.f32 %v542_v1, 1e-24 }
 0x15b   : > { %1308 = vrsqrt.f32 %v544_v51 }
 0x15c   : > { %1209 = vmatmul.mubr.msk.f32.gmra.mxu1 %vm557_vm2, %v556_v53 }
 0x168   : > { %v1309_v6 = vpop.eup %1308 }
 0x1f8   : > { %v660_v4 = vpop.f32.mrf.mxu1 }
 0x1f9   : > { %v719_v5 = vmul.f32 %v1307_v3, %v660_v4 }
 0x1fa   : > { %v662_v7 = vpop.f32.mrf.mxu1 }
 0x1fb   : > { %v787_v8 = vsub.f32 1.0, %v719_v5  ;;  %v720_v9 = vmul.f32 %v1309_v6, %v662_v7  ;;  %v1737_v7 = vpop.permute.xlu0 %738 }
 0x1fc   : > { %v666_v10 = vpop.f32.mrf.mxu1 }
 0x1fd   : > { %v791_v11 = vmul.f32 0.5, %v787_v8  ;;  %v788_v12 = vsub.f32 1.0, %v720_v9  ;;  %v721_v13 = vmul.f32 %v1307_v3, %v666_v10 }
 0x1fe   : > { %v668_v14 = vpop.f32.mrf.mxu1 }
 0x1ff   : > { %v795_v15 = vmax.f32 %v791_v11, 0.01  ;;  %v792_v16 = vmul.f32 0.5, %v788_v12  ;;  %v789_v17 = vsub.f32 1.0, %v721_v13  ;;  %v722_v18 = vmul.f32 %v1309_v6, %v668_v14  ;;  %v734_v12 = vpop.permute.xlu1 %733 }
 0x200   : > { %v1685_v19 = vpop.f32.mrf.mxu1 }
 0x201   : > { %v799_v20 = vmin.f32 %v795_v15, 0.99  ;;  %v796_v21 = vmax.f32 %v792_v16, 0.01  ;;  %v793_v22 = vmul.f32 0.5, %v789_v17  ;;  %v790_v23 = vsub.f32 1.0, %v722_v18 }
 0x202   : > { %v1687_v24 = vpop.f32.mrf.mxu1 }
 0x203   : > { %1310 = vlog2.f32 %v799_v20  ;;  %v800_v25 = vmin.f32 %v796_v21, 0.99  ;;  %v797_v26 = vmax.f32 %v793_v22, 0.01  ;;  %v794_v27 = vmul.f32 0.5, %v790_v23 }
 0x204   : > { %v1689_v28 = vpop.f32.mrf.mxu1 }
 0x205   : > { %1312 = vlog2.f32 %v800_v25  ;;  %v801_v29 = vmin.f32 %v797_v26, 0.99  ;;  %v798_v30 = vmax.f32 %v794_v27, 0.01 }
 0x206   : > { %v1691_v31 = vpop.f32.mrf.mxu1 }
 0x207   : > { %1314 = vlog2.f32 %v801_v29  ;;  %v802_v32 = vmin.f32 %v798_v30, 0.99 }
 0x208   : > { %v1693_v33 = vpop.f32.mrf.mxu1 }
 0x209   : > { %1316 = vlog2.f32 %v802_v32 }
 0x20a   : > { %v1695_v34 = vpop.f32.mrf.mxu1 }
 0x20c   : > { %v1697_v35 = vpop.f32.mrf.mxu1 }
 0x20e   : > { %v1699_v36 = vpop.f32.mrf.mxu1 }
 0x210   : > { %v1311_v37 = vpop.eup %1310  ;;  %v1703_v39 = vpop.f32.mrf.mxu1 }
 0x211   : > { %v1701_v38 = vmul.f32 0.6931472, %v1311_v37  ;;  %v749_v37 = vpop.permute.xlu0 %748 }
 0x212   : > { %v1313_v40 = vpop.eup %1312  ;;  %v1709_v46 = vpop.f32.mrf.mxu1 }
 0x213   : > { %v869_v41 = vrot.slane %v1701_v38, 2  ;;  %v1706_v42 = vmul.f32 0.6931472, %v1313_v40  ;;  %v843_v49 = vrot.slane %v1701_v38, 4  ;;  %v901_v58 = vrot.slane %v1701_v38, 5 }
 0x214   : > { %v1315_v43 = vpop.eup %1314  ;;  %v1725_v63 = vpop.f32.mrf.mxu1  ;;  %v831_v40 = vlaneseq }
 0x215   : > { %v870_v44 = vrot.slane %v1706_v42, 2  ;;  %v808_v45 = vmul.f32 0.6931472, %v1315_v43  ;;  %v1016_v48 = vrot.slane %v1706_v42, 6  ;;  %v1715_v53 = vadd.f32 %v869_v41, %v1701_v38  ;;  %v744_v43 = vpop.permute.xlu1 %743 }
 0x216   : > { %v1317_v47 = vpop.eup %1316  ;;  %v844_v57 = vrot.slane %v1706_v42, 4  ;;  %v902_v51 = vrot.slane %v1706_v42, 5  ;;  %v1745_v16 = vpop.f32.mrf.mxu1  ;;  %vm1073_vm3 = vcmp.lt.s32.totalorder %v831_v40, 256 }
 0x217   : > { %v874_v50 = vadd.f32 %v870_v44, %v1706_v42  ;;  %v813_v52 = vrot.slane %v808_v45, 1  ;;  %v875_v54 = vrot.slane %v808_v45, 4  ;;  %v983_v55 = vrot.slane %v808_v45, 5 }
 0x218   : > { %v810_v56 = vmul.f32 0.6931472, %v1317_v47  ;;  %v819_v61 = vrot.slane %v808_v45, 3  ;;  %v1761_v27 = vadd.f32 %v901_v58, %v1715_v53  ;;  %v708_v32 = vpop.f32.mrf.mxu1 }
 0x219   : > { %v1719_v59 = vadd.f32 %v1016_v48, %v874_v50  ;;  %v817_v60 = vadd.f32 %v813_v52, %v1701_v38  ;;  %v1723_v62 = vadd.f32 %v875_v54, %v1715_v53  ;;  %v1728_v0 = vadd.f32 %v983_v55, %v1715_v53 }
 0x21a   : > { %v814_v1 = vrot.slane %v810_v56, 1  ;;  %v876_v2 = vrot.slane %v810_v56, 4  ;;  %v820_v9 = vrot.slane %v810_v56, 3  ;;  %v984_v11 = vrot.slane %v810_v56, 5 }
 0x21b   : > { %v1023_v3 = vmul.f32 1.442695, %v1719_v59  ;;  %v1732_v4 = vadd.f32 %v819_v61, %v817_v60  ;;  %v881_v5 = vmul.f32 1.442695, %v1723_v62  ;;  %v1735_v6 = vadd.f32 %v875_v54, %v817_v60 }
 0x21c   : > { %v818_v8 = vadd.f32 %v814_v1, %v1706_v42  ;;  %v1740_v10 = vadd.f32 %v876_v2, %v874_v50  ;;  %v989_v15 = vmul.f32 1.442695, %v1728_v0  ;;  %v1751_v20 = vadd.f32 %v843_v49, %v817_v60 }
 0x21d   : > { %1318 = vpow2.f32 %v1023_v3  ;;  %v825_v13 = vmul.f32 1.442695, %v1732_v4  ;;  %v929_v14 = vmul.f32 1.442695, %v1735_v6  ;;  %v1754_v22 = vadd.f32 %v984_v11, %v874_v50 }
 0x21e   : > { %1320 = vpow2.f32 %v881_v5  ;;  %v1747_v17 = vadd.f32 %v820_v9, %v818_v8  ;;  %v1749_v18 = vadd.f32 %v876_v2, %v818_v8  ;;  %v883_v21 = vmul.f32 1.442695, %v1740_v10 }
 0x21f   : > { %1322 = vpow2.f32 %v825_v13  ;;  %v1756_v23 = vadd.f32 %v844_v57, %v818_v8  ;;  %v991_v29 = vmul.f32 1.442695, %v1754_v22  ;;  %v1764_v30 = vadd.f32 %v902_v51, %v874_v50  ;;  %v710_v50 = vpop.f32.mrf.mxu1 }
 0x220   : > { %1324 = vpow2.f32 %v929_v14  ;;  %v827_v25 = vmul.f32 1.442695, %v1747_v17  ;;  %v931_v26 = vmul.f32 1.442695, %v1749_v18  ;;  %v849_v41 = vmul.f32 1.442695, %v1751_v20 }
 0x221   : > { %1326 = vpow2.f32 %v989_v15  ;;  %v1767_v42 = vadd.f32 %v901_v58, %v817_v60  ;;  %v851_v44 = vmul.f32 1.442695, %v1756_v23  ;;  %v1770_v45 = vadd.f32 %v902_v51, %v818_v8  ;;  %v754_v60 = vpop.permute.xlu1 %753  ;;  %v714_v61 = vpop.f32.mrf.mxu1 }
 0x222   : > { %1328 = vpow2.f32 %v827_v25  ;;  %v907_v47 = vmul.f32 1.442695, %v1761_v27  ;;  %v1015_v48 = vrot.slane %v1701_v38, 6  ;;  %v909_v49 = vmul.f32 1.442695, %v1764_v30  ;;  %v759_v38 = vpop.permute.xlu0 %758 }
 0x223   : > { %1330 = vpow2.f32 %v883_v21  ;;  %v1776_v52 = vshrl.u32 %v831_v40, 7  ;;  %v957_v54 = vmul.f32 1.442695, %v1767_v42  ;;  %v959_v56 = vmul.f32 1.442695, %v1770_v45 }
 0x224   : > { %1332 = vpow2.f32 %v931_v26  ;;  %v1780_v55 = vadd.f32 %v1015_v48, %v1715_v53  ;;  %v1414_v57 = vmov 1966171168   ;;  %v771_v3 = vadd.f32 %v734_v12, %v1685_v19 }
 0x225   : > { %1334 = vpow2.f32 %v991_v29  ;;  %v1783_v58 = vunpack.c.l.s4 %v1414_v57  ;;  %v1788_v2 = vsub.s32 7, %v1776_v52  ;;  %v1793_v5 = vsub.s32 0, %v1776_v52 }
 0x226   : > { %1336 = vpow2.f32 %v849_v41  ;;  %v1021_v53 = vmul.f32 1.442695, %v1780_v55  ;;  %v772_v11 = vadd.f32 %v734_v12, %v1687_v24  ;;  %v773_v13 = vadd.f32 %v1737_v7, %v1689_v28  ;;  %v716_v24 = vpop.f32.mrf.mxu1 }
 0x227   : > { %1338 = vpow2.f32 %v851_v44  ;;  %v1056_v8 = vunpack.c.0.s8 %v1783_v58  ;;  %v774_v14 = vadd.f32 %v1737_v7, %v1691_v31  ;;  %v775_v15 = vadd.f32 %v744_v43, %v1693_v33  ;;  %v769_v7 = vpop.permute.xlu0 %768 }
 0x228   : > { %1340 = vpow2.f32 %v907_v47  ;;  %v776_v19 = vadd.f32 %v744_v43, %v1695_v34  ;;  %v1804_v25 = vadd.f32 %v749_v37, %v1697_v35  ;;  %v1807_v26 = vadd.f32 %v749_v37, %v1699_v36  ;;  %v764_v35 = vpop.permute.xlu1 %763 }
 0x229   : > { %1342 = vpow2.f32 %v909_v49  ;;  %v779_v29 = vadd.f32 %v754_v60, %v1703_v39  ;;  %v1815_v33 = vadd.f32 %v754_v60, %v1709_v46  ;;  %v1822_v39 = vadd.f32 %v759_v38, %v1725_v63 }
 0x22a   : > { %v1785_v1 = vpop.eup %1318  ;;  %1344 = vpow2.f32 %v957_v54  ;;  %v1825_v37 = vadd.f32 %v759_v38, %v1745_v16  ;;  %v1827_v44 = vadd.f32 %v764_v35, %v708_v32  ;;  %v1829_v46 = vadd.f32 %v764_v35, %v710_v50 }
 0x22b   : > { %v1321_v51 = vpop.eup %1320  ;;  %1346 = vpow2.f32 %v959_v56  ;;  %v1831_v47 = vadd.f32 %v769_v7, %v714_v61  ;;  %v1833_v48 = vadd.f32 %v769_v7, %v716_v24  ;;  %v1042_v16 = vrot.slane %v1785_v1, %v1793_v5 }
 0x22c   : > { %v1323_v9 = vpop.eup %1322  ;;  %v892_v31 = vrot.slane %v1321_v51, %v1788_v2  ;;  %1348 = vpow2.f32 %v1021_v53  ;;  %v885_v63 = vmul.f32 %v1321_v51, %v1723_v62 }
 0x22d   : > { %v1325_v21 = vpop.eup %1324  ;;  %v834_v28 = vrot.slane %v1323_v9, %v1788_v2  ;;  %v829_v50 = vmul.f32 %v1323_v9, %v1732_v4 }
 0x22e   : > { %v1810_v12 = vpop.eup %1326  ;;  %v1818_v41 = vmul.f32 %v1325_v21, %v1735_v6  ;;  %v946_v36 = vrot.slane %v1325_v21, %v1793_v5  ;;  %v1837_v6 = vmul.f32 %v1785_v1, %v1719_v59  ;;  %v897_v38 = vmul.f32 %v892_v31, %v775_v15 }
 0x22f   : > { %v1329_v34 = vpop.eup %1328  ;;  %v1848_v56 = vmul.f32 %v1810_v12, %v1728_v0  ;;  %v839_v57 = vmul.f32 %v834_v28, %v771_v3  ;;  %v1006_v53 = vrot.slane %v1810_v12, %v1793_v5 }
 0x230   : > { %v1331_v43 = vpop.eup %1330  ;;  %v838_v54 = vrot.slane %v1329_v34, %v1788_v2  ;;  %v937_v59 = vrot.slane %v1818_v41, 1  ;;  %v830_v62 = vmul.f32 %v1329_v34, %v1747_v17  ;;  %v951_v61 = vmul.f32 %v946_v36, %v779_v29 }
 0x231   : > { %v1333_v49 = vpop.eup %1332  ;;  %v886_v21 = vmul.f32 %v1331_v43, %v1740_v10  ;;  %v896_v0 = vrot.slane %v1331_v43, %v1788_v2 }
 0x232   : > { %v1843_v32 = vpop.eup %1334  ;;  %v934_v15 = vmul.f32 %v1333_v49, %v1749_v18  ;;  %v840_v24 = vmul.f32 %v838_v54, %v772_v11  ;;  %v950_v10 = vrot.slane %v1333_v49, %v1793_v5 }
 0x233   : > { %v1337_v60 = vpop.eup %1336  ;;  %v994_v7 = vmul.f32 %v1843_v32, %v1754_v22 }
 0x234   : > { %v1339_v51 = vpop.eup %1338  ;;  %v853_v4 = vmul.f32 %v1337_v60, %v1751_v20  ;;  %v860_v9 = vrot.slane %v1337_v60, %v1788_v2 }
 0x235   : > { %v1341_v3 = vpop.eup %1340  ;;  %v854_v28 = vmul.f32 %v1339_v51, %v1756_v23  ;;  %v864_v17 = vrot.slane %v1339_v51, %v1788_v2  ;;  %v898_v23 = vmul.f32 %v896_v0, %v776_v19 }
 0x236   : > { %v1343_v29 = vpop.eup %1342  ;;  %v855_v31 = vadd.f32 %v853_v4, %v829_v50  ;;  %v865_v12 = vmul.f32 %v860_v9, %v773_v13  ;;  %v918_v34 = vrot.slane %v1341_v3, %v1788_v2  ;;  %v911_v43 = vmul.f32 %v1341_v3, %v1761_v27 }
 0x237   : > { %v1345_v20 = vpop.eup %1344  ;;  %v856_v35 = vadd.f32 %v854_v28, %v830_v62  ;;  %v866_v41 = vmul.f32 %v864_v17, %v774_v14  ;;  %v922_v18 = vrot.slane %v1343_v29, %v1788_v2  ;;  %v1010_v13 = vrot.slane %v1843_v32, %v1793_v5 }
 0x238   : > { %v1347_v11 = vpop.eup %1346  ;;  %v867_v36 = vadd.f32 %v865_v12, %v839_v57  ;;  %v912_v50 = vmul.f32 %v1343_v29, %v1764_v30  ;;  %v961_v49 = vmul.f32 %v1345_v20, %v1767_v42  ;;  %v974_v60 = vrot.slane %v1345_v20, %v1793_v5 }
 0x239   : > { %v868_v54 = vadd.f32 %v866_v41, %v840_v24  ;;  %v923_v14 = vmul.f32 %v918_v34, %v1804_v25  ;;  %v924_v2 = vmul.f32 %v922_v18, %v1807_v26  ;;  %v887_v57 = vadd.f32 %v885_v63, %v855_v31  ;;  %v1349_v19 = vpop.eup %1348 }
 0x23a   : > { %v899_v22 = vadd.f32 %v897_v38, %v867_v36  ;;  %v962_v27 = vmul.f32 %v1347_v11, %v1770_v45  ;;  %v978_v32 = vrot.slane %v1347_v11, %v1793_v5  ;;  %v888_v51 = vadd.f32 %v886_v21, %v856_v35 }
 0x23b   : > { %v900_v62 = vadd.f32 %v898_v23, %v868_v54  ;;  %v938_v4 = vrot.slane %v934_v15, 1  ;;  %v952_v42 = vmul.f32 %v950_v10, %v1815_v33  ;;  %v913_v9 = vadd.f32 %v911_v43, %v887_v57 }
 0x23c   : > { %v925_v30 = vadd.f32 %v923_v14, %v899_v22  ;;  %v965_v38 = vrot.slane %v961_v49, 1  ;;  %v979_v25 = vmul.f32 %v974_v60, %v1822_v39  ;;  %v914_v26 = vadd.f32 %v912_v50, %v888_v51 }
 0x23d   : > { %v926_v0 = vadd.f32 %v924_v2, %v900_v62  ;;  %v941_v3 = vadd.f32 %v937_v59, %v913_v9  ;;  %v1025_v24 = vmul.f32 %v1349_v19, %v1780_v55  ;;  %v1038_v45 = vrot.slane %v1349_v19, %v1793_v5 }
 0x23e   : > { %v953_v63 = vadd.f32 %v951_v61, %v925_v30  ;;  %v966_v21 = vrot.slane %v962_v27, 1  ;;  %v980_v15 = vmul.f32 %v978_v32, %v1825_v37  ;;  %v942_v17 = vadd.f32 %v938_v4, %v914_v26 }
 0x23f   : > { %v954_v28 = vadd.f32 %v952_v42, %v926_v0  ;;  %v997_v33 = vrot.slane %v1848_v56, 1  ;;  %v1011_v31 = vmul.f32 %v1006_v53, %v1827_v44  ;;  %v969_v39 = vadd.f32 %v965_v38, %v941_v3 }
 0x240   : > { %v981_v29 = vadd.f32 %v979_v25, %v953_v63  ;;  %v998_v12 = vrot.slane %v994_v7, 1  ;;  %v1012_v59 = vmul.f32 %v1010_v13, %v1829_v46  ;;  %v970_v55 = vadd.f32 %v966_v21, %v942_v17 }
 0x241   : > { %v982_v61 = vadd.f32 %v980_v15, %v954_v28  ;;  %v1001_v10 = vadd.f32 %v997_v33, %v969_v39  ;;  %v1029_v20 = vrot.slane %v1025_v24, 1  ;;  %v1043_v35 = vmul.f32 %v1038_v45, %v1831_v47 }
 0x242   : > { %v1013_v34 = vadd.f32 %v1011_v31, %v981_v29  ;;  %v1002_v41 = vadd.f32 %v998_v12, %v970_v55  ;;  %v1030_v56 = vrot.slane %v1837_v6, 1  ;;  %v1044_v44 = vmul.f32 %v1042_v16, %v1833_v48 }
 0x243   : > { %v1014_v37 = vadd.f32 %v1012_v59, %v982_v61  ;;  %v1033_v53 = vadd.f32 %v1029_v20, %v1001_v10  ;;  %v1059_v47 = vsub.s32 %v1056_v8, %v1776_v52 }
 0x244   : > { %v1045_v7 = vadd.f32 %v1043_v35, %v1013_v34  ;;  %v1034_v18 = vadd.f32 %v1030_v56, %v1002_v41 }
 0x245   : > { %v1046_v46 = vadd.f32 %v1044_v44, %v1014_v37  ;;  %v1049_v11 = vsub.f32 0.0, %v1033_v53 }
 0x246   : > { %1047 = vst [vmem:[%s218_s6] sm:$0xff] %v1045_v7  ;;  %v1050_v36 = vsub.f32 0.0, %v1034_v18 }
 0x247   : > { %1048 = vst [vmem:[%s218_s6 + $0x8] sm:$0xff] %v1046_v46 }
 0x248   : > { %v1053_v6 = vcombine.high %v1049_v11, %v1050_v36 }
 0x24a   : > { %v1060_v23 = vrot.slane %v1053_v6, %v1059_v47 }
 0x24c   : > { %v1061_v1 = vcombine.high %v1060_v23, %v1060_v23 }
 0x24e   : > { %v1068_v5 = vrot.slane %v1061_v1, %v1059_v47 }
 0x250   : > { %v1069_v52 = vcombine.high %v1068_v5, %v1068_v5 }
 0x252   : > { %1210 = vst.msk [vmem:[%s218_s6 + $0x10] ss:$8 sm:$0x3] %vm1073_vm3, %v1069_v52 }
 0x253   : > { %1363 = shalt.err (!%p1360_p3)
}
 0x254   : > { %s1364_s14 = scalar_lea.hbm %s1903_s10, 512  ;;  %s1368_s17 = scalar_lea.hbm %s1952_s5, 1024 }
 0x255   : > { %p1365_p4 = scmp.ne.s32.totalorder %s1903_s10, %s1364_s14  ;;  %p1369_p9 = scmp.lt.s32.totalorder %s1903_s10, %s1952_s5 }
 0x256   : > { %p1370_p10 = scmp.lt.s32.totalorder %s1368_s17, %s1364_s14 }
 0x257   : > { %p1366_p7 = pnand %p1365_p4, %p1487_p5 }
 0x258   : > { %p1371_p11 = por %p1370_p10, %p1369_p9 }
 0x259   : > { %p1367_p8 = pneg %p1366_p7 }
 0x25b   : > { %p1372_p12 = pnand %p1371_p11, %p1367_p8 }
 0x25d   : > { %1375 = shalt.err (!%p1372_p12)
}
 0x25e   : > { %s1416_s6 = smov 256   ;;  %s1417_s7 = smov 512  }
 0x25f   : > { %s1418_s8 = smov 16  }
 0x260   : > { %1259 = dma.vmem_to_hbm [thread:$0]  (%p1487_p5), %s1897_s30, 512, %s1903_s10, %s1907_s25, %s1416_s6, %s1417_s7, %s1418_s8  }
 0x261 PF: > { %p1265_p13 = scmp.ge.s32.totalorder %s1410_s21, 2  ;;  %s1107_s9 = sand.u32 1, %s1398_s18  }
 0x262   : > { %s1108_s11 = scalar_lea.sflag [#allocation3], %s1107_s9 }
 0x263   : > { %p1262_p0 = pnand %p1265_p13, %p1491_p6 }
 0x265   : > { %p1263_p1 = pneg %p1262_p0 }
 0x267   : > { %1393 = dma.done.wait (%p1263_p1), %s1108_s11, 512  }
 0x268   : > { %1395 = vsyncadd (%p1263_p1), %s1108_s11, 4294966784  ;;  %p15_p2 = scmp.ge.s32.totalorder %s1474_s24, 4   ;;  %s1955_s18 = smov %s1402_s19 }
 0x269   : > { %s1956_s19 = smov %s1406_s20  ;;  %s1957_s20 = smov %s1485_s27 }
 0x26a   : > { %s1958_s21 = smov %s1474_s24  ;;  %17 = sbr.rel (!%p15_p2) target bundleno = 3 (0x3), region = 76 }
 0x26f   :  { %1113 = vsyncpa [#allocation3], 1 }
 0x270   :  { %1115 = vsyncpa [#allocation3 + $0x1], 1 }

</bundles_post_ra>
